<compile_context>
chip_gen: v5e
topology: v5e:2x2
jax: 0.10.0
libtpu: 0.0.40
codegen_flags: <defaults>
</compile_context>

<pallas_src>
import jax
import jax.numpy as jnp
from jax import lax
from jax.experimental import pallas as pl
from jax.experimental.pallas import tpu as pltpu


def bottleneck_kernel(x_ref, w1_ref, b1_ref, w2_ref, b2_ref, w3_ref, b3_ref,
                      mask_ref, o_ref):
    # x_ref  : (NB, Cin, L)  NB samples of one grid block (f32, NCL layout)
    # w1_ref : (P, Cin)      conv1 (1x1) weight, bn1 scale folded in, bf16
    # w2_ref : (P, 3P)       conv2 (k=3) weight, taps [l-1 | l | l+1] along the
    #                        contraction axis, bn2 scale folded in, bf16
    # w3_ref : (Cout, P)     conv3 (1x1) weight, bn3 scale folded in, bf16
    # b*_ref : (C, 1)        folded BatchNorm bias (f32), lane-broadcast
    # mask_ref: (2, NB*L)    f32 0/1 boundary masks (row 0: l-1 tap, row 1: l+1)
    NB, Cin, L = x_ref.shape
    Lb = NB * L

    # Fold the NB samples onto the lane axis: (Cin, NB*L) bf16 MXU operand.
    x_mm = jnp.concatenate([x_ref[b].astype(jnp.bfloat16) for b in range(NB)],
                           axis=1)

    # --- conv1 (1x1, bn1 scale pre-folded) + bias + relu ---------------------
    h1 = jnp.dot(w1_ref[...], x_mm, preferred_element_type=jnp.float32)
    h1 = jnp.maximum(h1 + b1_ref[...], 0.0)

    # --- conv2 (k=3, pad=1, stride=1) + bias + relu --------------------------
    # XLU lane rolls build the +/-1 taps; the multiplicative 0/1 mask zeroes
    # the columns where the roll would wrap across a sample boundary
    # (lane % L == 0 for the l-1 tap, lane % L == L-1 for the l+1 tap).
    # All three taps are fused into one (P, 3P) @ (3P, NB*L) MXU matmul.
    mask = mask_ref[...]                                            # (2, Lb)
    prev = (pltpu.roll(h1, shift=1, axis=1) * mask[0:1, :]).astype(jnp.bfloat16)
    nxt = (pltpu.roll(h1, shift=Lb - 1, axis=1) * mask[1:2, :]).astype(jnp.bfloat16)
    taps = jnp.concatenate([prev, h1.astype(jnp.bfloat16), nxt], axis=0)  # (3P, Lb)
    h2 = jnp.dot(w2_ref[...], taps, preferred_element_type=jnp.float32)
    h2 = jnp.maximum(h2 + b2_ref[...], 0.0)

    # --- conv3 (1x1) + bias + residual + relu --------------------------------
    out = jnp.dot(w3_ref[...], h2.astype(jnp.bfloat16),
                  preferred_element_type=jnp.float32)
    out = out + b3_ref[...]
    for b in range(NB):  # per-sample lane-dense (Cout, L) stores
        res = out[:, b * L:(b + 1) * L] + x_ref[b]
        o_ref[b] = jnp.maximum(res, 0.0).astype(o_ref.dtype)


def bottleneck_pallas(x_ncl, p, *, num_blocks=None):
    """x_ncl: (N, Cin, L) like PyTorch Conv1d input; returns (N, Cout, L)."""
    N, Cin, L = x_ncl.shape
    P = p["w1"].shape[0]
    Cout = p["w3"].shape[0]

    if num_blocks is None:
        # Two parallel blocks keep both v7x TensorCores busy; the fold still
        # halves grid-step overhead on single-core v5e/v6e.
        num_blocks = 2 if (N % 2 == 0 and N >= 2) else 1
    assert N % num_blocks == 0
    NB = N // num_blocks
    Lb = NB * L

    # 0/1 boundary masks for the k=3 conv taps over the folded lane axis.
    lane = jnp.arange(Lb, dtype=jnp.int32) % L
    mask = jnp.stack([(lane != 0), (lane != L - 1)]).astype(jnp.float32)  # (2, Lb)

    act_spec = pl.BlockSpec((NB, Cin, L), lambda g: (g, 0, 0))
    out_spec = pl.BlockSpec((NB, Cout, L), lambda g: (g, 0, 0))

    def resident(shape):
        # Constant block index across the grid -> fetched once, VMEM-resident.
        return pl.BlockSpec(shape, lambda g: (0, 0))

    return pl.pallas_call(
        bottleneck_kernel,
        out_shape=jax.ShapeDtypeStruct((N, Cout, L), x_ncl.dtype),
        grid=(num_blocks,),
        in_specs=[
            act_spec,
            resident((P, Cin)), resident((P, 1)),
            resident((P, 3 * P)), resident((P, 1)),
            resident((Cout, P)), resident((Cout, 1)),
            resident((2, Lb)),
        ],
        out_specs=out_spec,
        compiler_params=pltpu.CompilerParams(
            dimension_semantics=("parallel",),
            vmem_limit_bytes=32 * 1024 * 1024,
        ),
    )(x_ncl, p["w1"], p["b1"], p["w2"], p["b2"], p["w3"], p["b3"], mask)


def bottleneck_reference(x_ncl, tw, b):
    """Pure-JAX reference (NCL lax.conv): eval-mode BN with its scale folded
    into the (bf16-rounded) conv weights — mathematically the PyTorch forward —
    and bf16-rounded conv inputs / f32 accumulation to mirror kernel numerics."""
    dn = ("NCH", "OIH", "NCH")

    def conv(x, w, pad):
        return lax.conv_general_dilated(
            x.astype(jnp.bfloat16).astype(jnp.float32),
            w.astype(jnp.float32),
            (1,), [pad], dimension_numbers=dn,
            precision=lax.Precision.HIGHEST)

    h = jnp.maximum(conv(x_ncl, tw["w1"], (0, 0)) + b["b1"][None, :, None], 0.0)
    h = jnp.maximum(conv(h, tw["w2"], (1, 1)) + b["b2"][None, :, None], 0.0)
    h = conv(h, tw["w3"], (0, 0)) + b["b3"][None, :, None] + x_ncl
    return jnp.maximum(h, 0.0)


def make_params(key, inplanes, planes):
    """Deterministic synthetic parameters (torch layouts) + folded eval-BN.

    BN scale is folded into the conv weights (per output row) before the bf16
    cast; both the kernel and the reference consume the identical folded
    weights so the comparison is apples-to-apples."""
    exp = 4
    k1, k2, k3 = jax.random.split(key, 3)
    # torch conv weight layouts: (out, in, k)
    w1_t = jax.random.normal(k1, (planes, inplanes, 1), jnp.float32) * 0.1
    w2_t = jax.random.normal(k2, (planes, planes, 3), jnp.float32) * 0.1
    w3_t = jax.random.normal(k3, (planes * exp, planes, 1), jnp.float32) * 0.1

    def bn_fold(c, seed_shift):
        gamma = jnp.linspace(0.8, 1.2, c, dtype=jnp.float32)
        beta = jnp.linspace(-0.1, 0.1, c, dtype=jnp.float32)
        mean = jnp.linspace(-0.05, 0.05, c, dtype=jnp.float32) + 0.01 * seed_shift
        var = 1.0 + jnp.linspace(0.0, 0.2, c, dtype=jnp.float32)
        eps = 1e-5
        scale = gamma / jnp.sqrt(var + eps)
        bias = beta - mean * scale
        return scale, bias

    s1, b1 = bn_fold(planes, 0)
    s2, b2 = bn_fold(planes, 1)
    s3, b3 = bn_fold(planes * exp, 2)

    # Fold BN scale into the conv weights, then round to bf16 (MXU dtype).
    w1f = (w1_t * s1[:, None, None]).astype(jnp.bfloat16)
    w2f = (w2_t * s2[:, None, None]).astype(jnp.bfloat16)
    w3f = (w3_t * s3[:, None, None]).astype(jnp.bfloat16)

    torch_w = {"w1": w1f, "w2": w2f, "w3": w3f}
    biases = {"b1": b1, "b2": b2, "b3": b3}

    # Kernel layouts (weight-stationary, NCL): 1x1 convs -> (out, in);
    # k=3 conv -> taps concatenated along the contraction axis, tap order
    # [l-1, l, l+1] matching torch kernel positions k = 0, 1, 2.
    w2cat = jnp.concatenate([w2f[:, :, 0], w2f[:, :, 1], w2f[:, :, 2]], axis=1)
    kernel_p = {
        "w1": w1f[:, :, 0],             # (P, Cin)   bf16
        "w2": w2cat,                    # (P, 3P)    bf16
        "w3": w3f[:, :, 0],             # (Cout, P)  bf16
        "b1": b1[:, None], "b2": b2[:, None], "b3": b3[:, None],
    }
    return torch_w, biases, kernel_p


if __name__ == "__main__":
    # Bottleneck(inplanes=64, planes=16): out channels = 4*16 = 64 == inplanes,
    # so the identity residual add is well-defined (stride=1, downsample=None).
    # N=4, L=128 -> two grid blocks of (Cin, 256) lanes each.
    N, inplanes, planes, L = 4, 64, 16, 128
    key = jax.random.PRNGKey(0)
    kx, kp = jax.random.split(key)
    x = jax.random.normal(kx, (N, inplanes, L), jnp.float32)

    torch_w, biases, kernel_p = make_params(kp, inplanes, planes)

    out = jax.block_until_ready(bottleneck_pallas(x, kernel_p))

    ref = bottleneck_reference(x, torch_w, biases)
    assert out.shape == ref.shape
    max_err = float(jnp.max(jnp.abs(out - ref)))
    assert jnp.allclose(out, ref, rtol=2e-3, atol=2e-3), max_err

    print("KERNEL_OK")
</pallas_src>

<mosaic_0001>
module attributes {stable_mosaic.version = 11 : i64} {
  func.func @bottleneck_kernel(%arg0: i32, %arg1: memref<2x64x128xf32, #tpu.memory_space<vmem>>, %arg2: memref<16x64xbf16, #tpu.memory_space<vmem>>, %arg3: memref<16x1xf32, #tpu.memory_space<vmem>>, %arg4: memref<16x48xbf16, #tpu.memory_space<vmem>>, %arg5: memref<16x1xf32, #tpu.memory_space<vmem>>, %arg6: memref<64x16xbf16, #tpu.memory_space<vmem>>, %arg7: memref<64x1xf32, #tpu.memory_space<vmem>>, %arg8: memref<2x256xf32, #tpu.memory_space<vmem>>, %arg9: memref<2x64x128xf32, #tpu.memory_space<vmem>>) attributes {dimension_semantics = [#tpu.dimension_semantics<parallel>], iteration_bounds = array<i64: 2>, scalar_prefetch = 0 : i64, scratch_operands = 0 : i64, tpu.core_type = #tpu.core_type<tc>, window_params = [{transform_indices = @transform_0, window_bounds = array<i64: 2, 64, 128>}, {pipeline_mode = #tpu.pipeline_mode<synchronous>, transform_indices = @transform_1, window_bounds = array<i64: 16, 64>}, {pipeline_mode = #tpu.pipeline_mode<synchronous>, transform_indices = @transform_2, window_bounds = array<i64: 16, 1>}, {pipeline_mode = #tpu.pipeline_mode<synchronous>, transform_indices = @transform_3, window_bounds = array<i64: 16, 48>}, {pipeline_mode = #tpu.pipeline_mode<synchronous>, transform_indices = @transform_4, window_bounds = array<i64: 16, 1>}, {pipeline_mode = #tpu.pipeline_mode<synchronous>, transform_indices = @transform_5, window_bounds = array<i64: 64, 16>}, {pipeline_mode = #tpu.pipeline_mode<synchronous>, transform_indices = @transform_6, window_bounds = array<i64: 64, 1>}, {pipeline_mode = #tpu.pipeline_mode<synchronous>, transform_indices = @transform_7, window_bounds = array<i64: 2, 256>}, {transform_indices = @transform_8, window_bounds = array<i64: 2, 64, 128>}]} {
    %c0 = arith.constant 0 : index
    %c0_0 = arith.constant 0 : index
    %c0_1 = arith.constant 0 : index
    %0 = vector.load %arg1[%c0, %c0_0, %c0_1] : memref<2x64x128xf32, #tpu.memory_space<vmem>>, vector<1x64x128xf32>
    %1 = vector.shape_cast %0 : vector<1x64x128xf32> to vector<64x128xf32>
    %2 = arith.truncf %1 : vector<64x128xf32> to vector<64x128xbf16>
    %c1 = arith.constant 1 : index
    %c0_2 = arith.constant 0 : index
    %c0_3 = arith.constant 0 : index
    %3 = vector.load %arg1[%c1, %c0_2, %c0_3] : memref<2x64x128xf32, #tpu.memory_space<vmem>>, vector<1x64x128xf32>
    %4 = vector.shape_cast %3 : vector<1x64x128xf32> to vector<64x128xf32>
    %5 = arith.truncf %4 : vector<64x128xf32> to vector<64x128xbf16>
    %6 = tpu.concatenate %2, %5 in 1 : vector<64x128xbf16>, vector<64x128xbf16> -> vector<64x256xbf16>
    %c0_4 = arith.constant 0 : index
    %c0_5 = arith.constant 0 : index
    %7 = vector.load %arg2[%c0_4, %c0_5] : memref<16x64xbf16, #tpu.memory_space<vmem>>, vector<16x64xbf16>
    %cst = arith.constant dense<0.000000e+00> : vector<16x256xf32>
    %8 = tpu.matmul %7, %6, %cst {dimension_numbers = #tpu.dot_dimension_numbers<[1], [0], [0], [1], [0, 0, 1, 1], [], []>} : vector<16x64xbf16>, vector<64x256xbf16>, vector<16x256xf32> -> vector<16x256xf32>
    %c0_6 = arith.constant 0 : index
    %c0_7 = arith.constant 0 : index
    %9 = vector.load %arg3[%c0_6, %c0_7] : memref<16x1xf32, #tpu.memory_space<vmem>>, vector<16x1xf32>
    %10 = vector.broadcast %9 : vector<16x1xf32> to vector<16x256xf32>
    %11 = arith.addf %8, %10 : vector<16x256xf32>
    %cst_8 = arith.constant 0.000000e+00 : f32
    %12 = vector.broadcast %cst_8 : f32 to vector<16x256xf32>
    %13 = arith.maximumf %11, %12 : vector<16x256xf32>
    %c0_9 = arith.constant 0 : index
    %c0_10 = arith.constant 0 : index
    %14 = vector.load %arg8[%c0_9, %c0_10] : memref<2x256xf32, #tpu.memory_space<vmem>>, vector<2x256xf32>
    %c1_i32 = arith.constant 1 : i32
    %15 = tpu.dynamic_rotate %13 by %c1_i32 dim 1 : vector<16x256xf32>, i32 -> vector<16x256xf32>
    %16 = vector.extract_strided_slice %14 {offsets = [0, 0], sizes = [1, 256], strides = [1, 1]} : vector<2x256xf32> to vector<1x256xf32>
    %17 = vector.broadcast %16 : vector<1x256xf32> to vector<16x256xf32>
    %18 = arith.mulf %15, %17 : vector<16x256xf32>
    %19 = arith.truncf %18 : vector<16x256xf32> to vector<16x256xbf16>
    %c255_i32 = arith.constant 255 : i32
    %20 = tpu.dynamic_rotate %13 by %c255_i32 dim 1 : vector<16x256xf32>, i32 -> vector<16x256xf32>
    %21 = vector.extract_strided_slice %14 {offsets = [1, 0], sizes = [1, 256], strides = [1, 1]} : vector<2x256xf32> to vector<1x256xf32>
    %22 = vector.broadcast %21 : vector<1x256xf32> to vector<16x256xf32>
    %23 = arith.mulf %20, %22 : vector<16x256xf32>
    %24 = arith.truncf %23 : vector<16x256xf32> to vector<16x256xbf16>
    %25 = arith.truncf %13 : vector<16x256xf32> to vector<16x256xbf16>
    %26 = tpu.concatenate %19, %25, %24 in 0 : vector<16x256xbf16>, vector<16x256xbf16>, vector<16x256xbf16> -> vector<48x256xbf16>
    %c0_11 = arith.constant 0 : index
    %c0_12 = arith.constant 0 : index
    %27 = vector.load %arg4[%c0_11, %c0_12] : memref<16x48xbf16, #tpu.memory_space<vmem>>, vector<16x48xbf16>
    %cst_13 = arith.constant dense<0.000000e+00> : vector<16x256xf32>
    %28 = tpu.matmul %27, %26, %cst_13 {dimension_numbers = #tpu.dot_dimension_numbers<[1], [0], [0], [1], [0, 0, 1, 1], [], []>} : vector<16x48xbf16>, vector<48x256xbf16>, vector<16x256xf32> -> vector<16x256xf32>
    %c0_14 = arith.constant 0 : index
    %c0_15 = arith.constant 0 : index
    %29 = vector.load %arg5[%c0_14, %c0_15] : memref<16x1xf32, #tpu.memory_space<vmem>>, vector<16x1xf32>
    %30 = vector.broadcast %29 : vector<16x1xf32> to vector<16x256xf32>
    %31 = arith.addf %28, %30 : vector<16x256xf32>
    %cst_16 = arith.constant 0.000000e+00 : f32
    %32 = vector.broadcast %cst_16 : f32 to vector<16x256xf32>
    %33 = arith.maximumf %31, %32 : vector<16x256xf32>
    %c0_17 = arith.constant 0 : index
    %c0_18 = arith.constant 0 : index
    %34 = vector.load %arg6[%c0_17, %c0_18] : memref<64x16xbf16, #tpu.memory_space<vmem>>, vector<64x16xbf16>
    %35 = arith.truncf %33 : vector<16x256xf32> to vector<16x256xbf16>
    %cst_19 = arith.constant dense<0.000000e+00> : vector<64x256xf32>
    %36 = tpu.matmul %34, %35, %cst_19 {dimension_numbers = #tpu.dot_dimension_numbers<[1], [0], [0], [1], [0, 0, 1, 1], [], []>} : vector<64x16xbf16>, vector<16x256xbf16>, vector<64x256xf32> -> vector<64x256xf32>
    %c0_20 = arith.constant 0 : index
    %c0_21 = arith.constant 0 : index
    %37 = vector.load %arg7[%c0_20, %c0_21] : memref<64x1xf32, #tpu.memory_space<vmem>>, vector<64x1xf32>
    %38 = vector.broadcast %37 : vector<64x1xf32> to vector<64x256xf32>
    %39 = arith.addf %36, %38 : vector<64x256xf32>
    %40 = vector.extract_strided_slice %39 {offsets = [0, 0], sizes = [64, 128], strides = [1, 1]} : vector<64x256xf32> to vector<64x128xf32>
    %c0_22 = arith.constant 0 : index
    %c0_23 = arith.constant 0 : index
    %c0_24 = arith.constant 0 : index
    %41 = vector.load %arg1[%c0_22, %c0_23, %c0_24] : memref<2x64x128xf32, #tpu.memory_space<vmem>>, vector<1x64x128xf32>
    %42 = vector.shape_cast %41 : vector<1x64x128xf32> to vector<64x128xf32>
    %43 = arith.addf %40, %42 : vector<64x128xf32>
    %cst_25 = arith.constant 0.000000e+00 : f32
    %44 = vector.broadcast %cst_25 : f32 to vector<64x128xf32>
    %45 = arith.maximumf %43, %44 : vector<64x128xf32>
    %c0_26 = arith.constant 0 : index
    %c0_27 = arith.constant 0 : index
    %c0_28 = arith.constant 0 : index
    %46 = vector.load %arg9[%c0_26, %c0_27, %c0_28] : memref<2x64x128xf32, #tpu.memory_space<vmem>>, vector<1x64x128xf32>
    %47 = vector.shape_cast %46 : vector<1x64x128xf32> to vector<64x128xf32>
    %48 = vector.shape_cast %45 : vector<64x128xf32> to vector<1x64x128xf32>
    tpu.vector_store %arg9[%c0_26, %c0_27, %c0_28], %48 {strides = array<i32>} : memref<2x64x128xf32, #tpu.memory_space<vmem>>, vector<1x64x128xf32>,
    %49 = vector.extract_strided_slice %39 {offsets = [0, 128], sizes = [64, 128], strides = [1, 1]} : vector<64x256xf32> to vector<64x128xf32>
    %c1_29 = arith.constant 1 : index
    %c0_30 = arith.constant 0 : index
    %c0_31 = arith.constant 0 : index
    %50 = vector.load %arg1[%c1_29, %c0_30, %c0_31] : memref<2x64x128xf32, #tpu.memory_space<vmem>>, vector<1x64x128xf32>
    %51 = vector.shape_cast %50 : vector<1x64x128xf32> to vector<64x128xf32>
    %52 = arith.addf %49, %51 : vector<64x128xf32>
    %cst_32 = arith.constant 0.000000e+00 : f32
    %53 = vector.broadcast %cst_32 : f32 to vector<64x128xf32>
    %54 = arith.maximumf %52, %53 : vector<64x128xf32>
    %c1_33 = arith.constant 1 : index
    %c0_34 = arith.constant 0 : index
    %c0_35 = arith.constant 0 : index
    %55 = vector.load %arg9[%c1_33, %c0_34, %c0_35] : memref<2x64x128xf32, #tpu.memory_space<vmem>>, vector<1x64x128xf32>
    %56 = vector.shape_cast %55 : vector<1x64x128xf32> to vector<64x128xf32>
    %57 = vector.shape_cast %54 : vector<64x128xf32> to vector<1x64x128xf32>
    tpu.vector_store %arg9[%c1_33, %c0_34, %c0_35], %57 {strides = array<i32>} : memref<2x64x128xf32, #tpu.memory_space<vmem>>, vector<1x64x128xf32>,
    return
  }
  func.func @transform_0(%arg0: i32) -> (i32, i32, i32) {
    %c0_i32 = arith.constant 0 : i32
    %c0_i32_0 = arith.constant 0 : i32
    %c0_i32_1 = arith.constant 0 : i32
    return %arg0, %c0_i32, %c0_i32_0 : i32, i32, i32
  }
  func.func @transform_1(%arg0: i32) -> (i32, i32) {
    %c0_i32 = arith.constant 0 : i32
    %c0_i32_0 = arith.constant 0 : i32
    %c0_i32_1 = arith.constant 0 : i32
    return %c0_i32, %c0_i32_0 : i32, i32
  }
  func.func @transform_2(%arg0: i32) -> (i32, i32) {
    %c0_i32 = arith.constant 0 : i32
    %c0_i32_0 = arith.constant 0 : i32
    %c0_i32_1 = arith.constant 0 : i32
    return %c0_i32, %c0_i32_0 : i32, i32
  }
  func.func @transform_3(%arg0: i32) -> (i32, i32) {
    %c0_i32 = arith.constant 0 : i32
    %c0_i32_0 = arith.constant 0 : i32
    %c0_i32_1 = arith.constant 0 : i32
    return %c0_i32, %c0_i32_0 : i32, i32
  }
  func.func @transform_4(%arg0: i32) -> (i32, i32) {
    %c0_i32 = arith.constant 0 : i32
    %c0_i32_0 = arith.constant 0 : i32
    %c0_i32_1 = arith.constant 0 : i32
    return %c0_i32, %c0_i32_0 : i32, i32
  }
  func.func @transform_5(%arg0: i32) -> (i32, i32) {
    %c0_i32 = arith.constant 0 : i32
    %c0_i32_0 = arith.constant 0 : i32
    %c0_i32_1 = arith.constant 0 : i32
    return %c0_i32, %c0_i32_0 : i32, i32
  }
  func.func @transform_6(%arg0: i32) -> (i32, i32) {
    %c0_i32 = arith.constant 0 : i32
    %c0_i32_0 = arith.constant 0 : i32
    %c0_i32_1 = arith.constant 0 : i32
    return %c0_i32, %c0_i32_0 : i32, i32
  }
  func.func @transform_7(%arg0: i32) -> (i32, i32) {
    %c0_i32 = arith.constant 0 : i32
    %c0_i32_0 = arith.constant 0 : i32
    %c0_i32_1 = arith.constant 0 : i32
    return %c0_i32, %c0_i32_0 : i32, i32
  }
  func.func @transform_8(%arg0: i32) -> (i32, i32, i32) {
    %c0_i32 = arith.constant 0 : i32
    %c0_i32_0 = arith.constant 0 : i32
    %c0_i32_1 = arith.constant 0 : i32
    return %arg0, %c0_i32, %c0_i32_0 : i32, i32, i32
  }
}

</mosaic_0001>

<bundles_post_ra>
// kernel: tpu_custom_call.1
= control target key start
LH: loop header
LB: loop body
LE: loop exit
PB: predicated region body
PF: predicated region fallthrough
CT: control target
= control target key end

     0   :  { %13 = vsyncpa [#allocation3], 0  ;;  %s1523_s0 = inlined_call_operand.hbm [shape: f32[4,64,128], index: 0, kind: input, shape index: {}]   ;;  %s1524_s1 = inlined_call_operand.vmem [shape: bf16[16,64], index: 1, kind: input, shape index: {}]   ;;  %s1525_s2 = inlined_call_operand.vmem [shape: f32[16,1], index: 2, kind: input, shape index: {}]   ;;  %s1526_s3 = inlined_call_operand.vmem [shape: bf16[16,48], index: 3, kind: input, shape index: {}]   ;;  %s1527_s4 = inlined_call_operand.vmem [shape: f32[16,1], index: 4, kind: input, shape index: {}]   ;;  %s1528_s5 = inlined_call_operand.vmem [shape: bf16[64,16], index: 5, kind: input, shape index: {}]   ;;  %s1529_s6 = inlined_call_operand.vmem [shape: f32[64,1], index: 6, kind: input, shape index: {}]   ;;  %s1530_s7 = inlined_call_operand.vmem [shape: f32[2,256], index: 7, kind: input, shape index: {}]   ;;  %s1531_s8 = inlined_call_operand.hbm [shape: f32[4,64,128], index: 8, kind: output, shape index: {}]  }
   0x1   :  { %15 = vsyncpa [#allocation3 + $0x1], 0 }
   0x2   :  { %16 = vsyncpa [#allocation4], 0 }
   0x3   :  { %18 = vsyncpa [#allocation4 + $0x1], 0  ;;  %s1196_s27 = smov 0   ;;  %s1198_s28 = smov 0  }
   0x4   :  { %s1200_s29 = smov 0   ;;  %s1202_s30 = smov 0  }
   0x5 LB: > { %1533 = sst [smem:[#allocation8_spill]] %s1138_s29  ;;  %s1217_s9 = sadd.s32 4294967295, %s1142_s30   ;;  %s1142_s30 = sphi %s1202_s30, %s1545_s30   ;;  %s1138_s29 = sphi %s1200_s29, %s1542_s29   ;;  %s1134_s28 = sphi %s1198_s28, %s1544_s28   ;;  %s1130_s27 = sphi %s1196_s27, %s1543_s27  }
   0x6   : > { %s903_s10 = sadd.s32 4294967294, %s1142_s30   ;;  %s1221_s11 = sadd.s32 1, %s1142_s30  }
   0x7   : > { %s31_s12 = sadd.s32 1, %s1138_s29  ;;  %s28_s13 = ssub.s32 %s1142_s30, %s1221_s11 }
   0x8   : > { %p38_p0 = scmp.ne.s32.totalorder %s1138_s29, %s1134_s28  ;;  %p29_p1 = scmp.eq.s32.totalorder %s28_s13, 0 }
   0x9   : > { %p39_p2 = scmp.eq.s32.totalorder %s1142_s30, 0  ;;  %p44_p3 = scmp.ne.s32.totalorder %s1134_s28, %s1130_s27 }
   0xa   : > { %p45_p4 = scmp.eq.s32.totalorder %s1217_s9, 0  ;;  %p215_p7 = scmp.eq.s32.totalorder %s1217_s9, 1 }
   0xb   : > { %s1233_s14 = scalar_select %p29_p1, %s1138_s29, %s31_s12  }
   0xc   : > { %p1235_p5 = por %p39_p2, %p38_p0  ;;  %p1239_p6 = por %p45_p4, %p44_p3 }
   0xd   : > { %1534 = sst [smem:[#allocation9_spill]] %s1233_s14  ;;  %p221_p8 = scmp.eq.s32.totalorder %s903_s10, 1 }
   0xe   : > { %p1002_p10 = scmp.lt.s32.totalorder %s1142_s30, 2  ;;  %p1246_p11 = por %p215_p7, %p38_p0 }
   0xf   : > { %p1250_p12 = por %p221_p8, %p44_p3  ;;  %s262_s19 = sand.u32 1, %s1138_s29  }
  0x10   : > { %s980_s20 = sshll.u32 %s1142_s30, 7  ;;  %s906_s21 = sshll.u32 %s262_s19, 7 }
  0x11   : > { %s272_s24 = scalar_lea.hbm %s1523_s0, %s980_s20  ;;  %s266_s26 = scalar_lea.vmem [#allocation2], %s906_s21 }
  0x12   : > { %s273_s25 = sshll.u32 %s272_s24, 4  ;;  %s275_s10 = sshll.u32 %s266_s26, 4  ;;  %s274_s25 = int_to_ptr.hbm [resolvable:$true] %s273_s25  ;;  %s276_s10 = int_to_ptr.vmem [resolvable:$true] %s275_s10 }
  0x13   : > { %p1261_p13 = pnand %p1002_p10, %p1235_p5  ;;  %p910_p0 = scmp.ge.s32.totalorder %s1142_s30, 1 }
  0x14   : > { %p283_p1 = scmp.lt.s32.totalorder %s1142_s30, 3  ;;  %s263_s13 = scalar_lea.sflag [#allocation3], %s262_s19 }
  0x15   : > { %s1046_s14 = sshra.s32 %s274_s25, 4  ;;  %p1050_p3 = pneg %p1261_p13  ;;  %s1047_s14 = int_to_ptr.hbm [resolvable:$true] %s1046_s14 }
  0x16   : > { %s1048_s29 = scalar_lea.hbm %s1047_s14, 128  ;;  %s1053_s15 = scalar_lea.hbm %s1523_s0, 256 }
  0x17   : > { %p1049_p2 = scmp.ne.s32.totalorder %s1047_s14, %s1048_s29  ;;  %p1054_p5 = scmp.lt.s32.totalorder %s1047_s14, %s1523_s0 }
  0x18   : > { %p1055_p8 = scmp.lt.s32.totalorder %s1053_s15, %s1048_s29 }
  0x19   : > { %p1051_p4 = pnand %p1050_p3, %p1049_p2 }
  0x1a   : > { %p1056_p10 = por %p1055_p8, %p1054_p5 }
  0x1b   : > { %p1052_p7 = pneg %p1051_p4 }
  0x1d   : > { %p1057_p9 = pnand %p1056_p10, %p1052_p7 }
  0x1f   : > { %1060 = shalt.err (!%p1057_p9)
}
  0x20   : > { %s1144_s19 = smov 128   ;;  %s1145_s24 = smov 8  }
  0x21   : > { %997 = dma.hbm_to_vmem [thread:$0]  (!%p1261_p13), %s274_s25, 2048, %s276_s10, %s263_s13, %s1144_s19, %s1144_s19, %s1145_s24  }
  0x22   : > { %p284_p2 = pnand %p910_p0, %p283_p1 }
  0x23   : > { %s1282_s26 = sand.u32 (!%p284_p2), 1, %s1134_s28  }
  0x24   : > { %287 = sbr.rel (%p284_p2) target bundleno = 678 (0x2a6), region = 52  ;;  %s911_s29 = sshll.u32 (!%p284_p2), %s1282_s26, 7 }
  0x25   : > { %s290_s14 = scalar_lea.sflag (!%p284_p2), [#allocation3], %s1282_s26  ;;  %s1288_s20 = scalar_lea.vmem (!%p284_p2), [#allocation2], %s911_s29 }
  0x29   : > { %1121 = dma.done.wait (%p1239_p6), %s290_s14, 2048  }
  0x2a   : > { %1123 = vsyncadd (%p1239_p6), %s290_s14, 4294965248  ;;  %v1146_v0 = vmov 0   ;;  %v1295_v1 = vld [vmem:[%s1288_s20 + $0x30] sm:$0xff]  ;;  %v1298_v2 = vld [vmem:[%s1288_s20 + $0x38] sm:$0xff]  ;;  %vm430_vm0 = vcmask 523264   ;;  %s1147_s15 = smov 1  }
  0x2b   : > { %1043 = vset.pattern.permute.xlu0 %v1146_v0  ;;  %1044 = vset.pattern.permute.xlu1 %v1146_v0  ;;  %v1301_v3 = vld [vmem:[%s1288_s20 + $0x70] sm:$0xff]  ;;  %v344_v4 = vpack.c.bf16 %v1295_v1, %v1295_v1  ;;  %v345_v5 = vpack.c.bf16 %v1298_v2, %v1298_v2  ;;  %v1308_v6 = vld [vmem:[%s1288_s20 + $0x78] sm:$0xff]  ;;  %v1313_v8 = vld [vmem:[%s1288_s20 + $0x20] sm:$0xff]  ;;  %s1148_s22 = smov 127   ;;  %vm571_vm3 = vcmask 392192   ;;  %vm685_vm4 = vcmask 130048  }
  0x2c   : > { %1045 = vset.pattern.permute.xlu2 %v1146_v0  ;;  %v361_v7 = vpack.c.bf16 %v1301_v3, %v1301_v3  ;;  %v1316_v9 = vld [vmem:[%s1288_s20 + $0x28] sm:$0xff]  ;;  %v362_v10 = vpack.c.bf16 %v1308_v6, %v1308_v6  ;;  %v342_v11 = vpack.c.bf16 %v1313_v8, %v1313_v8  ;;  %v1325_v13 = vld [vmem:[%s1288_s20 + $0x60] sm:$0xff]  ;;  %v1331_v15 = vld [vmem:[%s1288_s20 + $0x10] sm:$0xff]  ;;  %s1457_s25 = scalar_lea.vmem [#allocation5], %s911_s29  ;;  %s988_s29 = sshll.u32 %s1217_s9, 7 }
  0x2d   : > { %v343_v12 = vpack.c.bf16 %v1316_v9, %v1316_v9  ;;  %v1328_v14 = vld [vmem:[%s1288_s20 + $0x68] sm:$0xff]  ;;  %v377_v16 = vunpack.c.l.b16 %v344_v4  ;;  %v378_v17 = vunpack.c.l.b16 %v345_v5  ;;  %v359_v19 = vpack.c.bf16 %v1325_v13, %v1325_v13  ;;  %v1336_v20 = vld [vmem:[%s1288_s20 + $0x18] sm:$0xff]  ;;  %v1339_v21 = vld [vmem:[%s1288_s20 + $0x50] sm:$0xff]  ;;  %s826_s13 = scalar_lea.hbm %s1531_s8, %s988_s29  ;;  %s827_s21 = sshll.u32 %s1457_s25, 4  ;;  %s828_s21 = int_to_ptr.vmem [resolvable:$true] %s827_s21 }
  0x2e   : > { %v401_v18 = vunpack.c.l.b16 %v361_v7  ;;  %v402_v22 = vunpack.c.l.b16 %v362_v10  ;;  %v375_v23 = vunpack.c.l.b16 %v342_v11  ;;  %v360_v25 = vpack.c.bf16 %v1328_v14, %v1328_v14  ;;  %v1344_v26 = vld [vmem:[%s1288_s20 + $0x58] sm:$0xff]  ;;  %v1347_v27 = vld [vmem:[%s1288_s20] sm:$0xff]  ;;  %v1354_v32 = vld [vmem:[%s1288_s20 + $0x8] sm:$0xff]  ;;  %s1096_s14 = scalar_lea.hbm %s1531_s8, 256 }
  0x2f   : > { %v376_v24 = vunpack.c.l.b16 %v343_v12  ;;  %v382_v28 = vpack.c.b16 %v378_v17, %v377_v16  ;;  %v399_v29 = vunpack.c.l.b16 %v359_v19  ;;  %v340_v30 = vpack.c.bf16 %v1331_v15, %v1331_v15  ;;  %v1357_v33 = vld [vmem:[%s1288_s20 + $0x40] sm:$0xff]  ;;  %v1365_v39 = vld [vmem:[%s1288_s20 + $0x48] sm:$0xff] }
  0x30   : > { %v341_v31 = vpack.c.bf16 %v1336_v20, %v1336_v20  ;;  %v413_v34 = vld [vmem:[%s1525_s2] sm:$0xff]  ;;  %v406_v35 = vpack.c.b16 %v402_v22, %v401_v18  ;;  %v400_v37 = vunpack.c.l.b16 %v360_v25  ;;  %v357_v38 = vpack.c.bf16 %v1339_v21, %v1339_v21  ;;  %v414_v53 = vld [vmem:[%s1525_s2 + $0x8] sm:$0xff] }
  0x31   : > { %v381_v36 = vpack.c.b16 %v376_v24, %v375_v23  ;;  %417 = vperm.xlu0 %1043, %v413_v34   ;;  %438 = vmatpush.bf16.msra.mxu0 %v382_v28  ;;  %v373_v40 = vunpack.c.l.b16 %v340_v30  ;;  %v358_v42 = vpack.c.bf16 %v1344_v26, %v1344_v26  ;;  %v338_v43 = vpack.c.bf16 %v1347_v27, %v1347_v27  ;;  %v981_v59 = vld [vmem:[%s1524_s1] sm:$0xff]  ;;  %v620_v34 = vld [vmem:[%s1529_s6 + $0x18] sm:$0xff] }
  0x32   : > { %v374_v41 = vunpack.c.l.b16 %v341_v31  ;;  %452 = vmatpush.bf16.msra.mxu1 %v406_v35  ;;  %v405_v44 = vpack.c.b16 %v400_v37, %v399_v29  ;;  %v397_v45 = vunpack.c.l.b16 %v357_v38  ;;  %v339_v46 = vpack.c.bf16 %v1354_v32, %v1354_v32  ;;  %v617_v31 = vld [vmem:[%s1529_s6] sm:$0xff]  ;;  %v623_v35 = vld [vmem:[%s1529_s6 + $0x30] sm:$0xff] }
  0x33   : > { %v355_v47 = vpack.c.bf16 %v1357_v33, %v1357_v33  ;;  %v398_v48 = vunpack.c.l.b16 %v358_v42  ;;  %v356_v49 = vpack.c.bf16 %v1365_v39, %v1365_v39  ;;  %v371_v51 = vunpack.c.l.b16 %v338_v43  ;;  %v554_v38 = vld [vmem:[%s1527_s4] sm:$0xff] }
  0x34   : > { %v380_v50 = vpack.c.b16 %v374_v41, %v373_v40  ;;  %v372_v52 = vunpack.c.l.b16 %v339_v46  ;;  %v475_v37 = vlaneseq  ;;  %v466_v40 = vld [vmem:[%s1530_s7] sm:$0xf]  ;;  %v618_v46 = vld [vmem:[%s1529_s6 + $0x8] sm:$0xff] }
  0x35   : > { %439 = vmatpush.bf16.msra.mxu0 %v381_v36  ;;  %v404_v54 = vpack.c.b16 %v398_v48, %v397_v45  ;;  %v395_v55 = vunpack.c.l.b16 %v355_v47  ;;  %v396_v56 = vunpack.c.l.b16 %v356_v49  ;;  %v508_v43 = vperm.slane %v466_v40, 1  ;;  %v555_v47 = vld [vmem:[%s1527_s4 + $0x8] sm:$0xff] }
  0x36   : > { %453 = vmatpush.bf16.msra.mxu1 %v405_v44  ;;  %v379_v57 = vpack.c.b16 %v372_v52, %v371_v51  ;;  %v476_v41 = vand.u32 127, %v475_v37  ;;  %v509_v44 = vperm.slane %v466_v40, 3  ;;  %v483_v52 = vperm.slane %v466_v40, 0 }
  0x37   : > { %v403_v58 = vpack.c.b16 %v396_v56, %v395_v55  ;;  %v512_v48 = vperm.slane %v508_v43, 1 }
  0x38   : > { %vm503_vm1 = vcmp.lt.s32.totalorder %v476_v41, 127  ;;  %v513_v49 = vperm.slane %v509_v44, 1  ;;  %vm477_vm2 = vcmp.lt.s32.totalorder %v476_v41, 1  ;;  %v982_v41 = vld [vmem:[%s1526_s3] sm:$0xff] }
  0x39   : > { %422 = vperm.xlu0 %1043, %v414_v53   ;;  %440 = vmatpush.bf16.msra.mxu0 %v380_v50  ;;  %v484_v53 = vperm.slane %v466_v40, 2 }
  0x3a   : > { %454 = vmatpush.bf16.msra.mxu1 %v404_v54 }
  0x3d   : > { %441 = vmatpush.bf16.msra.mxu0 %v379_v57  ;;  %v621_v57 = vld [vmem:[%s1529_s6 + $0x20] sm:$0xff] }
  0x3e   : > { %455 = vmatpush.bf16.msra.mxu1 %v403_v58  ;;  %v619_v58 = vld [vmem:[%s1529_s6 + $0x10] sm:$0xff] }
  0x40   : > { %925 = vmatmul.msk.bf16.vlgmr.msra.gmra.mxu0 %vm430_vm0, %v981_v59 }
  0x41   : > { %926 = vmatmul.msk.bf16.vlgmr.msra.gmra.mxu1 %vm430_vm0, %v981_v59 }
  0xa3   : > { %v418_v60 = vpop.permute.xlu0 %417 }
  0xab   : > { %v423_v10 = vpop.permute.xlu0 %422 }
  0xbd   : > { %v443_v61 = vpop.f32.mrf.mxu0 }
  0xbe   : > { %v444_v62 = vadd.f32 %v443_v61, %v418_v60  ;;  %v457_v63 = vpop.f32.mrf.mxu1 }
  0xbf   : > { %v458_v0 = vadd.f32 %v457_v63, %v418_v60  ;;  %v487_v60 = vperm.slane %v483_v52, 0 }
  0xc0   : > { %v462_v4 = vmax.f32 %v444_v62, 0.0  ;;  %v488_v62 = vperm.slane %v484_v53, 0 }
  0xc1   : > { %v463_v5 = vmax.f32 %v458_v0, 0.0 }
  0xc2   : > { %467 = vrot.lane.b32.xlu0 %v462_v4, %s1147_s15  ;;  %495 = vrot.lane.b32.xlu1 %v462_v4, %s1148_s22 }
  0xc3   : > { %499 = vrot.lane.b32.xlu2 %v463_v5, %s1148_s22  ;;  %v520_v7 = vpack.c.bf16 %v463_v5, %v462_v4 }
  0xc5   : > { %v445_v11 = vpop.f32.mrf.mxu0  ;;  %v534_v23 = vunpack.c.l.b16 %v520_v7  ;;  %v535_v25 = vunpack.c.h.b16 %v520_v7 }
  0xc6   : > { %v446_v12 = vadd.f32 %v445_v11, %v423_v10  ;;  %v459_v16 = vpop.f32.mrf.mxu1 }
  0xc7   : > { %v460_v17 = vadd.f32 %v459_v16, %v423_v10 }
  0xc8   : > { %v464_v18 = vmax.f32 %v446_v12, 0.0 }
  0xc9   : > { %v465_v19 = vmax.f32 %v460_v17, 0.0 }
  0xca   : > { %497 = vrot.lane.b32.xlu1 %v464_v18, %s1148_s22 }
  0xcb   : > { %501 = vrot.lane.b32.xlu2 %v465_v19, %s1148_s22  ;;  %473 = vrot.lane.b32.xlu0 %v465_v19, %s1147_s15  ;;  %v521_v22 = vpack.c.bf16 %v465_v19, %v464_v18  ;;  %s814_s22 = scalar_lea.sflag [#allocation4], %s1282_s26 }
  0xcd   : > { %v536_v24 = vunpack.c.l.b16 %v521_v22  ;;  %v537_v28 = vunpack.c.h.b16 %v521_v22 }
  0xcf   : > { %v1383_v29 = vpack.c.b16 %v536_v24, %v534_v23  ;;  %v1385_v30 = vpack.c.b16 %v537_v28, %v535_v25  ;;  %v624_v24 = vld [vmem:[%s1529_s6 + $0x38] sm:$0xff] }
  0xd2   : > { %469 = vrot.lane.b32.xlu1 %v464_v18, %s1147_s15 }
  0xd3   : > { %471 = vrot.lane.b32.xlu2 %v463_v5, %s1147_s15  ;;  %627 = vperm.xlu0 %1043, %v617_v31   ;;  %s829_s15 = sshll.u32 %s826_s13, 4  ;;  %s830_s15 = int_to_ptr.hbm [resolvable:$true] %s829_s15 }
  0xd4   : > { %s1090_s23 = sshra.s32 %s830_s15, 4  ;;  %s1091_s23 = int_to_ptr.hbm [resolvable:$true] %s1090_s23 }
  0xd5   : > { %s1092_s9 = scalar_lea.hbm %s1091_s23, 128  ;;  %p1097_p0 = scmp.lt.s32.totalorder %s1091_s23, %s1531_s8 }
  0xd6   : > { %p1093_p6 = scmp.ne.s32.totalorder %s1091_s23, %s1092_s9  ;;  %p1098_p1 = scmp.lt.s32.totalorder %s1096_s14, %s1092_s9 }
  0xd8   : > { %p1094_p9 = pnand %p1093_p6, %p1246_p11  ;;  %p1099_p3 = por %p1098_p1, %p1097_p0 }
  0xda   : > { %558 = vperm.xlu1 %1044, %v554_v38   ;;  %p1095_p13 = pneg %p1094_p9 }
  0xdb   : > { %642 = vperm.xlu0 %1043, %v620_v34   ;;  %563 = vperm.xlu2 %1045, %v555_v47  }
  0xdc   : > { %p1100_p4 = pnand %p1099_p3, %p1095_p13 }
  0xe2   : > { %632 = vperm.xlu1 %1044, %v618_v46  }
  0xe3   : > { %657 = vperm.xlu0 %1043, %v623_v35   ;;  %637 = vperm.xlu2 %1045, %v619_v58   ;;  %v622_v35 = vld [vmem:[%s1529_s6 + $0x28] sm:$0xff] }
  0xea   : > { %647 = vperm.xlu1 %1044, %v621_v57  }
  0xeb   : > { %652 = vperm.xlu2 %1045, %v622_v35  }
  0xf2   : > { %662 = vperm.xlu1 %1044, %v624_v24  }
 0x11d   : > { %v500_v36 = vpop.permute.xlu2 %499 }
 0x125   : > { %v502_v42 = vpop.permute.xlu2 %501 }
 0x12d   : > { %v472_v59 = vpop.permute.xlu2 %471 }
 0x134   : > { %v496_v45 = vpop.permute.xlu1 %495  ;;  %v468_v54 = vpop.permute.xlu0 %467 }
 0x135   : > { %v504_v50 = vsel %vm503_vm1, %v496_v45, %v500_v36  ;;  %v506_v51 = vsel %vm503_vm1, %v500_v36, %v496_v45  ;;  %v478_v63 = vsel %vm477_vm2, %v468_v54, %v472_v59  ;;  %v480_v5 = vsel %vm477_vm2, %v472_v59, %v468_v54 }
 0x136   : > { %v514_v55 = vmul.f32 %v512_v48, %v504_v50  ;;  %v515_v56 = vmul.f32 %v513_v49, %v506_v51  ;;  %v489_v16 = vmul.f32 %v487_v60, %v480_v5  ;;  %v490_v17 = vmul.f32 %v488_v62, %v478_v63  ;;  %v984_v5 = vld [vmem:[%s1528_s5 + $0x8] sm:$0xff] }
 0x138   : > { %v518_v7 = vpack.c.bf16 %v515_v56, %v514_v55  ;;  %v493_v38 = vpack.c.bf16 %v490_v17, %v489_v16 }
 0x13a   : > { %v544_v18 = vunpack.c.l.b16 %v518_v7  ;;  %v545_v22 = vunpack.c.h.b16 %v518_v7  ;;  %v524_v44 = vunpack.c.l.b16 %v493_v38  ;;  %v525_v46 = vunpack.c.h.b16 %v493_v38  ;;  %v986_v7 = vld [vmem:[%s1528_s5 + $0x18] sm:$0xff] }
 0x13c   : > { %v498_v61 = vpop.permute.xlu1 %497 }
 0x13d   : > { %v505_v0 = vsel %vm503_vm1, %v498_v61, %v502_v42  ;;  %v507_v4 = vsel %vm503_vm1, %v502_v42, %v498_v61  ;;  %v474_v25 = vpop.permute.xlu0 %473 }
 0x13e   : > { %v516_v10 = vmul.f32 %v512_v48, %v505_v0  ;;  %v517_v11 = vmul.f32 %v513_v49, %v507_v4  ;;  %v985_v4 = vld [vmem:[%s1528_s5 + $0x10] sm:$0xff] }
 0x140   : > { %v519_v12 = vpack.c.bf16 %v517_v11, %v516_v10 }
 0x142   : > { %v546_v19 = vunpack.c.l.b16 %v519_v12  ;;  %v547_v23 = vunpack.c.h.b16 %v519_v12 }
 0x144   : > { %v470_v28 = vpop.permute.xlu1 %469  ;;  %v548_v31 = vpack.c.b16 %v546_v19, %v544_v18  ;;  %v549_v34 = vpack.c.b16 %v547_v23, %v545_v22 }
 0x145   : > { %v479_v36 = vsel %vm477_vm2, %v470_v28, %v474_v25  ;;  %v481_v37 = vsel %vm477_vm2, %v474_v25, %v470_v28  ;;  %v628_v11 = vpop.permute.xlu0 %627 }
 0x146   : > { %v491_v40 = vmul.f32 %v487_v60, %v481_v37  ;;  %v492_v42 = vmul.f32 %v488_v62, %v479_v36  ;;  %580 = vmatpush.bf16.msrb.mxu0 %v548_v31  ;;  %594 = vmatpush.bf16.msra.mxu3 %v549_v34  ;;  %v983_v60 = vld [vmem:[%s1528_s5] sm:$0xff] }
 0x148   : > { %v494_v43 = vpack.c.bf16 %v492_v42, %v491_v40 }
 0x14a   : > { %581 = vmatpush.bf16.msrb.mxu0 %v1383_v29  ;;  %595 = vmatpush.bf16.msra.mxu3 %v1385_v30  ;;  %v526_v45 = vunpack.c.l.b16 %v494_v43  ;;  %v527_v47 = vunpack.c.h.b16 %v494_v43  ;;  %v564_v30 = vpop.permute.xlu2 %563 }
 0x14c   : > { %v528_v48 = vpack.c.b16 %v526_v45, %v524_v44  ;;  %v529_v49 = vpack.c.b16 %v527_v47, %v525_v46  ;;  %v559_v51 = vpop.permute.xlu1 %558 }
 0x14d   : > { %v643_v43 = vpop.permute.xlu0 %642 }
 0x14e   : > { %582 = vmatpush.bf16.msrb.mxu0 %v528_v48  ;;  %596 = vmatpush.bf16.msra.mxu3 %v529_v49 }
 0x151   : > { %931 = vmatmul.msk.bf16.vlgmr.msrb.gmra.mxu0 %vm571_vm3, %v982_v41  ;;  %932 = vmatmul.msk.bf16.vlgmr.msra.gmra.mxu3 %vm571_vm3, %v982_v41 }
 0x152   : > { %v638_v23 = vpop.permute.xlu2 %637 }
 0x154   : > { %v633_v10 = vpop.permute.xlu1 %632 }
 0x15a   : > { %v653_v46 = vpop.permute.xlu2 %652 }
 0x15c   : > { %v648_v28 = vpop.permute.xlu1 %647 }
 0x1ce   : > { %v584_v50 = vpop.f32.mrf.mxu0 }
 0x1cf   : > { %v585_v52 = vadd.f32 %v584_v50, %v559_v51 }
 0x1d1   : > { %v603_v55 = vmax.f32 %v585_v52, 0.0 }
 0x1d4   : > { %v598_v29 = vpop.f32.mrf.mxu3 }
 0x1d5   : > { %v599_v57 = vadd.f32 %v598_v29, %v559_v51 }
 0x1d6   : > { %v586_v53 = vpop.f32.mrf.mxu0 }
 0x1d7   : > { %v587_v54 = vadd.f32 %v586_v53, %v564_v30  ;;  %v604_v62 = vmax.f32 %v599_v57, 0.0  ;;  %v658_v53 = vpop.permute.xlu0 %657 }
 0x1d9   : > { %v605_v56 = vmax.f32 %v587_v54, 0.0 }
 0x1db   : > { %v615_v58 = vpack.c.bf16 %v605_v56, %v603_v55 }
 0x1dc   : > { %v600_v59 = vpop.f32.mrf.mxu3 }
 0x1dd   : > { %v601_v61 = vadd.f32 %v600_v59, %v564_v30  ;;  %705 = vmatpush.bf16.msra.mxu2 %v615_v58 }
 0x1df   : > { %v606_v63 = vmax.f32 %v601_v61, 0.0 }
 0x1e0   : > { %949 = vmatmul.msk.bf16.vlgmr.msra.gmra.mxu2 %vm685_vm4, %v983_v60 }
 0x1e1   : > { %v616_v0 = vpack.c.bf16 %v606_v63, %v604_v62  ;;  %v663_v63 = vpop.permute.xlu1 %662 }
 0x1e3   : > { %734 = vmatpush.bf16.msrb.mxu1 %v616_v0  ;;  %989 = vmatpush.bf16.msrb.mxu3 %v616_v0 }
 0x1e6   : > { %953 = vmatmul.msk.bf16.vlgmr.msrb.gmra.mxu1 %vm685_vm4, %v983_v60  ;;  %955 = vmatmul.msk.bf16.vlgmr.msrb.gmra.mxu3 %vm685_vm4, %v985_v4 }
 0x1f0   : > { %950 = vmatmul.msk.bf16.gmra.mxu2 %vm685_vm4, %v984_v5 }
 0x1f6   : > { %954 = vmatmul.msk.bf16.gmra.mxu1 %vm685_vm4, %v984_v5  ;;  %956 = vmatmul.msk.bf16.gmra.mxu3 %vm685_vm4, %v986_v7 }
 0x200   : > { %951 = vmatmul.msk.bf16.gmra.mxu2 %vm685_vm4, %v985_v4 }
 0x210   : > { %952 = vmatmul.msk.bf16.gmra.mxu2 %vm685_vm4, %v986_v7 }
 0x263   : > { %v707_v12 = vpop.f32.mrf.mxu2  ;;  %v736_v16 = vpop.f32.mrf.mxu1 }
 0x264   : > { %v708_v17 = vadd.f32 %v707_v12, %v628_v11  ;;  %v737_v18 = vadd.f32 %v736_v16, %v628_v11 }
 0x266   : > { %v756_v19 = vadd.f32 %v708_v17, %v1347_v27  ;;  %v788_v22 = vadd.f32 %v1357_v33, %v737_v18 }
 0x268   : > { %v764_v24 = vmax.f32 %v756_v19, 0.0  ;;  %v796_v25 = vmax.f32 %v788_v22, 0.0 }
 0x269   : > { %v746_v31 = vpop.f32.mrf.mxu3 }
 0x26a   : > { %772 = vst [vmem:[%s1457_s25] sm:$0xff] %v764_v24  ;;  %v747_v34 = vadd.f32 %v746_v31, %v648_v28 }
 0x26b   : > { %965 = vst [vmem:[%s1457_s25 + $0x40] sm:$0xff] %v796_v25  ;;  %v709_v35 = vpop.f32.mrf.mxu2  ;;  %v738_v27 = vpop.f32.mrf.mxu1 }
 0x26c   : > { %v792_v33 = vadd.f32 %v1325_v13, %v747_v34  ;;  %v710_v36 = vadd.f32 %v709_v35, %v633_v10  ;;  %v739_v37 = vadd.f32 %v738_v27, %v633_v10 }
 0x26e   : > { %v800_v38 = vmax.f32 %v792_v33, 0.0  ;;  %v757_v40 = vadd.f32 %v710_v36, %v1354_v32  ;;  %v789_v42 = vadd.f32 %v1365_v39, %v739_v37 }
 0x270   : > { %969 = vst [vmem:[%s1457_s25 + $0x60] sm:$0xff] %v800_v38  ;;  %v765_v44 = vmax.f32 %v757_v40, 0.0  ;;  %v797_v45 = vmax.f32 %v789_v42, 0.0 }
 0x271   : > { %v748_v47 = vpop.f32.mrf.mxu3 }
 0x272   : > { %773 = vst [vmem:[%s1457_s25 + $0x8] sm:$0xff] %v765_v44  ;;  %v749_v48 = vadd.f32 %v748_v47, %v653_v46 }
 0x273   : > { %966 = vst [vmem:[%s1457_s25 + $0x48] sm:$0xff] %v797_v45  ;;  %v712_v13 = vpop.f32.mrf.mxu2  ;;  %v741_v49 = vpop.f32.mrf.mxu1 }
 0x274   : > { %v793_v41 = vadd.f32 %v1328_v14, %v749_v48  ;;  %v713_v50 = vadd.f32 %v712_v13, %v638_v23  ;;  %v742_v32 = vadd.f32 %v741_v49, %v638_v23 }
 0x276   : > { %v801_v51 = vmax.f32 %v793_v41, 0.0  ;;  %v758_v39 = vadd.f32 %v713_v50, %v1331_v15  ;;  %v790_v29 = vadd.f32 %v1339_v21, %v742_v32 }
 0x278   : > { %970 = vst [vmem:[%s1457_s25 + $0x68] sm:$0xff] %v801_v51  ;;  %v766_v52 = vmax.f32 %v758_v39, 0.0  ;;  %v798_v30 = vmax.f32 %v790_v29, 0.0 }
 0x279   : > { %v751_v54 = vpop.f32.mrf.mxu3 }
 0x27a   : > { %774 = vst [vmem:[%s1457_s25 + $0x10] sm:$0xff] %v766_v52  ;;  %v752_v55 = vadd.f32 %v751_v54, %v658_v53 }
 0x27b   : > { %967 = vst [vmem:[%s1457_s25 + $0x50] sm:$0xff] %v798_v30  ;;  %v714_v56 = vpop.f32.mrf.mxu2  ;;  %v743_v14 = vpop.f32.mrf.mxu1 }
 0x27c   : > { %v794_v57 = vadd.f32 %v1301_v3, %v752_v55  ;;  %v715_v58 = vadd.f32 %v714_v56, %v643_v43  ;;  %v744_v59 = vadd.f32 %v743_v14, %v643_v43 }
 0x27e   : > { %v802_v15 = vmax.f32 %v794_v57, 0.0  ;;  %v759_v21 = vadd.f32 %v715_v58, %v1336_v20  ;;  %v791_v60 = vadd.f32 %v1344_v26, %v744_v59 }
 0x280   : > { %971 = vst [vmem:[%s1457_s25 + $0x70] sm:$0xff] %v802_v15  ;;  %v767_v61 = vmax.f32 %v759_v21, 0.0  ;;  %v799_v62 = vmax.f32 %v791_v60, 0.0 }
 0x281   : > { %v753_v0 = vpop.f32.mrf.mxu3 }
 0x282   : > { %775 = vst [vmem:[%s1457_s25 + $0x18] sm:$0xff] %v767_v61  ;;  %v754_v4 = vadd.f32 %v753_v0, %v663_v63 }
 0x283   : > { %968 = vst [vmem:[%s1457_s25 + $0x58] sm:$0xff] %v799_v62  ;;  %v717_v5 = vpop.f32.mrf.mxu2 }
 0x284   : > { %v795_v3 = vadd.f32 %v1308_v6, %v754_v4  ;;  %v718_v7 = vadd.f32 %v717_v5, %v648_v28 }
 0x286   : > { %v803_v10 = vmax.f32 %v795_v3, 0.0  ;;  %v760_v20 = vadd.f32 %v718_v7, %v1313_v8 }
 0x288   : > { %972 = vst [vmem:[%s1457_s25 + $0x78] sm:$0xff] %v803_v10  ;;  %v768_v26 = vmax.f32 %v760_v20, 0.0 }
 0x28a   : > { %776 = vst [vmem:[%s1457_s25 + $0x20] sm:$0xff] %v768_v26 }
 0x28b   : > { %v719_v11 = vpop.f32.mrf.mxu2 }
 0x28c   : > { %v720_v12 = vadd.f32 %v719_v11, %v653_v46 }
 0x28e   : > { %v761_v16 = vadd.f32 %v720_v12, %v1316_v9 }
 0x290   : > { %v769_v17 = vmax.f32 %v761_v16, 0.0 }
 0x292   : > { %777 = vst [vmem:[%s1457_s25 + $0x28] sm:$0xff] %v769_v17 }
 0x293   : > { %v722_v18 = vpop.f32.mrf.mxu2 }
 0x294   : > { %v723_v19 = vadd.f32 %v722_v18, %v658_v53 }
 0x296   : > { %v762_v6 = vadd.f32 %v723_v19, %v1295_v1 }
 0x298   : > { %v770_v22 = vmax.f32 %v762_v6, 0.0 }
 0x29a   : > { %778 = vst [vmem:[%s1457_s25 + $0x30] sm:$0xff] %v770_v22 }
 0x29b   : > { %v724_v8 = vpop.f32.mrf.mxu2 }
 0x29c   : > { %v725_v23 = vadd.f32 %v724_v8, %v663_v63 }
 0x29e   : > { %v763_v9 = vadd.f32 %v725_v23, %v1298_v2 }
 0x2a0   : > { %v771_v24 = vmax.f32 %v763_v9, 0.0 }
 0x2a2   : > { %779 = vst [vmem:[%s1457_s25 + $0x38] sm:$0xff] %v771_v24 }
 0x2a3   : > { %1103 = shalt.err (!%p1100_p4)
}
 0x2a4   : > { %s1149_s26 = smov 128   ;;  %s1150_s25 = smov 8  }
 0x2a5   : > { %992 = dma.vmem_to_hbm [thread:$0]  (%p1246_p11), %s828_s21, 2048, %s830_s15, %s814_s22, %s1149_s26, %s1149_s26, %s1150_s25  }
 0x2a6 PF: > { %s844_s29 = sand.u32 1, %s1130_s27   ;;  %p1540_p7 = scmp.ge.s32.totalorder %s1142_s30, 2 }
 0x2a7   : > { %s845_s10 = scalar_lea.sflag [#allocation4], %s844_s29 }
 0x2a8   : > { %p999_p5 = pnand %p1540_p7, %p1250_p12 }
 0x2aa   : > { %p1000_p8 = pneg %p999_p5 }
 0x2ac   : > { %1125 = dma.done.wait (%p1000_p8), %s845_s10, 2048  }
 0x2ad   : > { %1127 = vsyncadd (%p1000_p8), %s845_s10, 4294965248  ;;  %s1541_s12 = sld [smem:[#allocation8_spill]]  ;;  %p21_p10 = scmp.ge.s32.totalorder %s1221_s11, 4  }
 0x2ae   : > { %s1542_s29 = sld [smem:[#allocation9_spill]]  ;;  %s1543_s27 = smov %s1134_s28 }
 0x2af   : > { %s1545_s30 = smov %s1221_s11  ;;  %23 = sbr.rel (!%p21_p10) target bundleno = 5 (0x5), region = 99 }
 0x2b3   : > { %s1544_s28 = smov %s1541_s12 }
 0x2b4   :  { %851 = vsyncpa [#allocation3], 1 }
 0x2b5   :  { %853 = vsyncpa [#allocation3 + $0x1], 1 }
 0x2b6   :  { %854 = vsyncpa [#allocation4], 1 }
 0x2b7   :  { %856 = vsyncpa [#allocation4 + $0x1], 1 }

</bundles_post_ra>
